<compile_context>
chip_gen: v7x
topology: tpu7x:2x2x1
jax: 0.10.0
libtpu: 0.0.40
codegen_flags: <defaults>
</compile_context>

<pallas_src>
import jax
import jax.numpy as jnp
from jax.experimental import pallas as pl
from jax.experimental.pallas import tpu as pltpu

_LANE = 128
_MAX_LANE_WIDTH = 2048
# ~4 MiB blocks: deep into the HBM-roofline plateau on v5e/v6e, and small
# enough per-step overhead on v7x.  2x double-buffered in + 2x out ~= 16 MiB.
_TARGET_BLOCK_BYTES = 4 * 1024 * 1024
# Explicit scoped-VMEM limit: safe on v5e/v6e (128 MiB phys) and v7x (64 MiB).
_VMEM_LIMIT_BYTES = 48 * 1024 * 1024
# Keep the 1-D grid at least this long when the tensor is big enough, so the
# pipeline overlaps DMA/compute and v7x's second TensorCore gets work.
_MIN_GRID_STEPS = 8


def _silu_kernel(x_ref, o_ref):
    # Elementwise hot path of LambdaModule(lambda x: x * sigmoid(x)).
    # f32 math keeps v5e (no bf16 VPU/EUP) correct; the tanh form needs a
    # single EUP op per element (vs. exp + divide for jax.nn.sigmoid).
    xf = x_ref[...].astype(jnp.float32)
    o_ref[...] = (xf * (0.5 * jnp.tanh(0.5 * xf) + 0.5)).astype(o_ref.dtype)


def _sublane_multiple(dtype):
    # Sub-32-bit dtypes pack along sublanes: f32 -> 8, bf16 -> 16, int8 -> 32.
    itemsize = jnp.dtype(dtype).itemsize
    return max(8, 32 // itemsize)


def _pick_lane_width(n, sub_mult):
    """Widest multiple of 128 (<= 2048) dividing n, preferring sublane-aligned,
    tileable row counts.  Returns 0 if n is not a multiple of 128."""
    divisors = [c for c in range(_MAX_LANE_WIDTH, _LANE - 1, -_LANE) if n % c == 0]
    if not divisors:
        return 0
    for c in divisors:
        r = n // c
        if r % sub_mult == 0 and r >= sub_mult * _MIN_GRID_STEPS:
            return c
    for c in divisors:
        if (n // c) % sub_mult == 0:
            return c
    return divisors[0]


def _pick_block_rows(rows, lane_w, itemsize, sub_mult):
    """Row-block size: ~_TARGET_BLOCK_BYTES, >= _MIN_GRID_STEPS grid steps,
    sublane-aligned, preferring an exact divisor of `rows` (no ragged block)."""
    if rows % sub_mult != 0 or rows <= sub_mult * _MIN_GRID_STEPS:
        # Small / sublane-ragged: one full-extent block (full-dim blocks are
        # exempt from the (8,128) divisibility requirement).
        return rows
    by_bytes = (_TARGET_BLOCK_BYTES // (lane_w * itemsize)) // sub_mult * sub_mult
    by_steps = (rows // _MIN_GRID_STEPS) // sub_mult * sub_mult
    cap = max(sub_mult, min(by_bytes, by_steps, rows))
    cand = cap
    floor = max(sub_mult, cap // 2)
    while cand >= floor:
        if rows % cand == 0:
            return cand
        cand -= sub_mult
    return cap  # no nearby divisor: Pallas masks the ragged final block.


def _silu_slab(slab):
    """Run the Pallas SiLU kernel on a lane-dense 2-D slab (rows, lane_w)."""
    rows, lane_w = slab.shape
    dtype = slab.dtype
    itemsize = jnp.dtype(dtype).itemsize
    sub_mult = _sublane_multiple(dtype)
    block_rows = _pick_block_rows(rows, lane_w, itemsize, sub_mult)
    grid = (pl.cdiv(rows, block_rows),)
    return pl.pallas_call(
        _silu_kernel,
        out_shape=jax.ShapeDtypeStruct((rows, lane_w), dtype),
        grid=grid,
        in_specs=[pl.BlockSpec((block_rows, lane_w), lambda i: (i, 0))],
        out_specs=pl.BlockSpec((block_rows, lane_w), lambda i: (i, 0)),
        compiler_params=pltpu.CompilerParams(
            dimension_semantics=("parallel",),
            vmem_limit_bytes=_VMEM_LIMIT_BYTES,
        ),
    )(slab)


def _silu_jnp(x):
    xf = x.astype(jnp.float32)
    return (xf * jax.nn.sigmoid(xf)).astype(x.dtype)


def lambda_module_forward(x):
    """Pallas implementation of LambdaModule(lambda x: x * sigmoid(x)).

    Accepts any array (e.g. NCHW activations), returns same shape/dtype.
    """
    orig_shape = x.shape
    n = x.size
    if n == 0:
        return x
    sub_mult = _sublane_multiple(x.dtype)
    flat = x.reshape(-1)

    lane_w = _pick_lane_width(n, sub_mult)
    if lane_w:
        out_flat = _silu_slab(flat.reshape(n // lane_w, lane_w)).reshape(-1)
    else:
        # n is not a multiple of 128: run the kernel on the 128-aligned prefix
        # and handle the tiny (<128 elem) tail with plain jnp — avoids the
        # full-tensor pad + slice round trips of the previous version.
        n_aligned = (n // _LANE) * _LANE
        pieces = []
        if n_aligned:
            lw = _pick_lane_width(n_aligned, sub_mult)
            prefix = flat[:n_aligned].reshape(n_aligned // lw, lw)
            pieces.append(_silu_slab(prefix).reshape(-1))
        tail = flat[n_aligned:]
        if tail.size:
            pieces.append(_silu_jnp(tail))
        out_flat = pieces[0] if len(pieces) == 1 else jnp.concatenate(pieces)

    return out_flat.reshape(orig_shape)


if __name__ == "__main__":
    key = jax.random.PRNGKey(0)

    # Small NCHW input consistent with a typical conv-net activation.
    x = jax.random.normal(key, (2, 4, 16, 16), dtype=jnp.float32)
    y = jax.block_until_ready(lambda_module_forward(x))
    assert y.shape == x.shape and y.dtype == x.dtype
    assert jnp.allclose(y, _silu_jnp(x), atol=2e-5, rtol=2e-5)

    # Larger input that exercises the multi-block (8-step) tiled grid path.
    x2 = jax.random.normal(jax.random.PRNGKey(1), (4, 32, 64, 128),
                           dtype=jnp.float32)
    y2 = jax.block_until_ready(lambda_module_forward(x2))
    assert jnp.allclose(y2, _silu_jnp(x2), atol=2e-5, rtol=2e-5)

    # bf16 input (sublane multiple 16).
    x3 = jax.random.normal(jax.random.PRNGKey(2), (4, 8, 32, 32),
                           dtype=jnp.bfloat16)
    y3 = jax.block_until_ready(lambda_module_forward(x3))
    assert y3.dtype == jnp.bfloat16
    assert jnp.allclose(y3.astype(jnp.float32), _silu_jnp(x3).astype(jnp.float32),
                        atol=2e-2, rtol=2e-2)

    # Size not a multiple of 128: aligned-prefix kernel + jnp tail path.
    x4 = jax.random.normal(jax.random.PRNGKey(3), (1000,), dtype=jnp.float32)
    y4 = jax.block_until_ready(lambda_module_forward(x4))
    assert jnp.allclose(y4, _silu_jnp(x4), atol=2e-5, rtol=2e-5)

    print("KERNEL_OK")
</pallas_src>

<mosaic_0001>
module attributes {stable_mosaic.version = 11 : i64} {
  func.func @_silu_kernel(%arg0: i32, %arg1: memref<8x256xf32, #tpu.memory_space<vmem>>, %arg2: memref<8x256xf32, #tpu.memory_space<vmem>>) attributes {dimension_semantics = [#tpu.dimension_semantics<parallel>], iteration_bounds = array<i64: 1>, scalar_prefetch = 0 : i64, scratch_operands = 0 : i64, tpu.core_type = #tpu.core_type<tc>, window_params = [{transform_indices = @transform_0, window_bounds = array<i64: 8, 256>}, {transform_indices = @transform_1, window_bounds = array<i64: 8, 256>}]} {
    %c0 = arith.constant 0 : index
    %c0_0 = arith.constant 0 : index
    %0 = vector.load %arg1[%c0, %c0_0] : memref<8x256xf32, #tpu.memory_space<vmem>>, vector<8x256xf32>
    %cst = arith.constant 5.000000e-01 : f32
    %1 = vector.broadcast %cst : f32 to vector<8x256xf32>
    %2 = arith.mulf %1, %0 : vector<8x256xf32>
    %3 = math.tanh %2 : vector<8x256xf32>
    %cst_1 = arith.constant 5.000000e-01 : f32
    %4 = vector.broadcast %cst_1 : f32 to vector<8x256xf32>
    %5 = arith.mulf %4, %3 : vector<8x256xf32>
    %cst_2 = arith.constant 5.000000e-01 : f32
    %6 = vector.broadcast %cst_2 : f32 to vector<8x256xf32>
    %7 = arith.addf %5, %6 : vector<8x256xf32>
    %8 = arith.mulf %0, %7 : vector<8x256xf32>
    %c0_3 = arith.constant 0 : index
    %c0_4 = arith.constant 0 : index
    %9 = vector.load %arg2[%c0_3, %c0_4] : memref<8x256xf32, #tpu.memory_space<vmem>>, vector<8x256xf32>
    tpu.vector_store %arg2[%c0_3, %c0_4], %8 {strides = array<i32>} : memref<8x256xf32, #tpu.memory_space<vmem>>, vector<8x256xf32>,
    return
  }
  func.func @transform_0(%arg0: i32) -> (i32, i32) {
    %c0_i32 = arith.constant 0 : i32
    %c0_i32_0 = arith.constant 0 : i32
    return %arg0, %c0_i32 : i32, i32
  }
  func.func @transform_1(%arg0: i32) -> (i32, i32) {
    %c0_i32 = arith.constant 0 : i32
    %c0_i32_0 = arith.constant 0 : i32
    return %arg0, %c0_i32 : i32, i32
  }
}

</mosaic_0001>

<bundles_post_ra>
// kernel: tpu_custom_call.1
= control target key start
LH: loop header
LB: loop body
LE: loop exit
PB: predicated region body
PF: predicated region fallthrough
CT: control target
= control target key end

     0   :  { %6 = vsyncpa [#allocation3], 0  ;;  %s140_s0 = inlined_call_operand.hbm [shape: f32[8,256], index: 0, kind: input, shape index: {}]   ;;  %s141_s1 = inlined_call_operand.hbm [shape: f32[8,256], index: 1, kind: output, shape index: {}]  }
   0x1   :  { %7 = vsyncpa [#allocation4], 0  ;;  %s104_s6 = smov [#allocation2]   ;;  %s56_s10 = scalar_lea.hbm %s140_s0, 256 }
   0x2   :  { %s14_s7 = sshll.u32 %s104_s6, 4  ;;  %p57_p0 = scmp.ne.s32.totalorder %s140_s0, %s56_s10  ;;  %s15_s7 = int_to_ptr.vmem [resolvable:$true] %s14_s7 }
   0x3   :  { %p60_p1 = scmp.lt.u32.totalorder %s56_s10, %s140_s0 }
   0x5   :  { %p62_p2 = pnand %p60_p1, %p57_p0 }
   0x7   :  { %65 = shalt.err (!%p62_p2)
}
   0x8   :  { %s66_s15 = scalar_lea.vmem %s15_s7, 256  ;;  %p71_p4 = scmp.lt.s32.totalorder %s15_s7, %s15_s7 }
   0x9   :  { %p67_p3 = scmp.ne.s32.totalorder %s15_s7, %s66_s15  ;;  %p72_p5 = scmp.lt.s32.totalorder %s66_s15, %s66_s15 }
   0xb   :  { %p73_p6 = por %p72_p5, %p71_p4 }
   0xd   :  { %p74_p7 = pnand %p73_p6, %p67_p3 }
   0xf   :  { %77 = shalt.err (!%p74_p7)
}
  0x10   :  { %17 = dma.hbm_to_vmem [thread:$0]  %s140_s0, 256, %s15_s7, [#allocation3]  }
  0x11   :  { %100 = dma.done.wait [#allocation3], 256  }
  0x12   :  { %101 = vsyncadd [#allocation3], 4294967040  ;;  %v21_v0 = vld [vmem:[#allocation2] sm:$0xff]  ;;  %v22_v1 = vld [vmem:[#allocation2 + $0x8] sm:$0xff]  ;;  %s105_s18 = smov [#allocation5]  }
  0x13   :  { %v23_v2 = vmul.f32 0.5, %v21_v0  ;;  %v24_v3 = vmul.f32 0.5, %v22_v1  ;;  %s41_s19 = sshll.u32 %s105_s18, 4  ;;  %s42_s19 = int_to_ptr.vmem [resolvable:$true] %s41_s19 }
  0x14   :  { %s78_s0 = scalar_lea.vmem %s42_s19, 256  ;;  %p83_p9 = scmp.lt.s32.totalorder %s42_s19, %s42_s19 }
  0x15   :  { %52 = vtanh.f32 %v23_v2  ;;  %p79_p8 = scmp.ne.s32.totalorder %s42_s19, %s78_s0  ;;  %p84_p10 = scmp.lt.s32.totalorder %s78_s0, %s78_s0 }
  0x16   :  { %54 = vtanh.f32 %v24_v3 }
  0x17   :  { %p85_p11 = por %p84_p10, %p83_p9 }
  0x19   :  { %p86_p12 = pnand %p85_p11, %p79_p8 }
  0x1f   :  { %v53_v4 = vpop.eup %52 }
  0x20   :  { %v55_v5 = vpop.eup %54  ;;  %v27_v6 = vmul.f32 0.5, %v53_v4 }
  0x21   :  { %v28_v7 = vmul.f32 0.5, %v55_v5 }
  0x22   :  { %v29_v8 = vadd.f32 0.5, %v27_v6 }
  0x23   :  { %v30_v9 = vadd.f32 0.5, %v28_v7 }
  0x24   :  { %v31_v10 = vmul.f32 %v29_v8, %v21_v0 }
  0x25   :  { %v32_v11 = vmul.f32 %v30_v9, %v22_v1 }
  0x26   :  { %33 = vst [vmem:[#allocation5] sm:$0xff] %v31_v10 }
  0x27   :  { %34 = vst [vmem:[#allocation5 + $0x8] sm:$0xff] %v32_v11 }
  0x28   :  { %89 = shalt.err (!%p86_p12)
}
  0x29   :  { %s90_s22 = scalar_lea.hbm %s141_s1, 256 }
  0x2a   :  { %p91_p13 = scmp.ne.s32.totalorder %s141_s1, %s90_s22  ;;  %p94_p0 = scmp.lt.u32.totalorder %s90_s22, %s141_s1 }
  0x2c   :  { %p96_p1 = pnand %p94_p0, %p91_p13 }
  0x2e   :  { %99 = shalt.err (!%p96_p1)
}
  0x2f   :  { %44 = dma.vmem_to_hbm [thread:$0]  %s42_s19, 256, %s141_s1, [#allocation4]  }
  0x30   :  { %102 = dma.done.wait [#allocation4], 256  }
  0x31   :  { %103 = vsyncadd [#allocation4], 4294967040 }
  0x32   :  { %48 = vsyncpa [#allocation3], 1 }
  0x33   :  { %49 = vsyncpa [#allocation4], 1 }

</bundles_post_ra>
